<compile_context>
chip_gen: v7x
topology: tpu7x:2x2x1
jax: 0.10.0
libtpu: 0.0.40
codegen_flags: <defaults>
</compile_context>

<pallas_src>
import functools
import math

import jax
import jax.numpy as jnp
from jax.experimental import pallas as pl
from jax.experimental.pallas import tpu as pltpu


LANES = 128
DEFAULT_TILE_ROWS = 8192          # 8192*128*4B = 4 MiB per f32 input buffer
SMALL_N_PALLAS_MIN = 1 << 18      # below this, a fused jnp expression is faster


def _round_up(x, m):
    return ((x + m - 1) // m) * m


def _sublane_multiple(dtype):
    bits = jnp.dtype(dtype).itemsize * 8
    return max(8, 256 // bits)    # 8 for 32-bit, 16 for bf16/f16, 32 for 8-bit


def _focal_elementwise(x, t, smoothing, alpha, gamma):
    """Per-element smoothed focal loss; math in f32, stable BCE-with-logits."""
    x = x.astype(jnp.float32)
    t = t.astype(jnp.float32)
    if smoothing != 0.0:
        t = t * (1.0 - smoothing) + 0.5 * smoothing
    # matches F.binary_cross_entropy_with_logits numerics
    bce = jnp.maximum(x, 0.0) - x * t + jnp.log1p(jnp.exp(-jnp.abs(x)))
    g = float(gamma)
    if g.is_integer() and g >= 0:
        gi = int(g)
        if gi == 0:
            focal = bce
        else:
            omp = 1.0 - jnp.exp(-bce)          # 1 - pt
            mod = omp                          # start from omp: saves a vmul + ones bcast
            for _ in range(gi - 1):
                mod = mod * omp
            focal = mod * bce
    else:
        focal = (1.0 - jnp.exp(-bce)) ** gamma * bce
    if alpha != 1.0:
        focal = alpha * focal
    return focal


def _smooth_focal_kernel(x_ref, t_ref, o_ref, *, smoothing, alpha, gamma,
                         tile_r, strip_r, lanes, need_mask, num_tiles,
                         n_valid_last):
    """Per grid step: sum focal loss over a (tile_r, lanes) block into (8, lanes)."""
    nstrips = tile_r // strip_r

    def accumulate(masked):
        if masked:
            # Indices are LOCAL to this tile (< tile_r * lanes), so int32 is safe
            # regardless of total n.  Built once, hoisted out of the strip loop.
            row = jax.lax.broadcasted_iota(jnp.int32, (strip_r, lanes), 0)
            lane = jax.lax.broadcasted_iota(jnp.int32, (strip_r, lanes), 1)
            base_idx = row * lanes + lane

        def body(s, acc):
            r0 = pl.multiple_of(s * strip_r, strip_r)
            f = _focal_elementwise(x_ref[pl.ds(r0, strip_r), :],
                                   t_ref[pl.ds(r0, strip_r), :],
                                   smoothing, alpha, gamma)
            if masked:
                gidx = base_idx + r0 * lanes
                f = jnp.where(gidx < n_valid_last, f, 0.0)
            # vreg-aligned regroup + pure-VALU add; lane-dense (8, 128) partial.
            return acc + f.reshape(strip_r // 8, 8, lanes).sum(axis=0)

        acc0 = jnp.zeros((8, lanes), jnp.float32)
        if nstrips == 1:
            return body(0, acc0)
        return jax.lax.fori_loop(0, nstrips, body, acc0, unroll=2)

    if not need_mask:
        o_ref[...] = accumulate(False)
    elif num_tiles == 1:
        o_ref[...] = accumulate(True)
    else:
        i = pl.program_id(0)
        last = num_tiles - 1

        @pl.when(i < last)
        def _():
            o_ref[...] = accumulate(False)     # steady state: no mask work at all

        @pl.when(i == last)
        def _():
            o_ref[...] = accumulate(True)      # pad-to-128 + ragged overhang masked


def smooth_focal_with_logits(inputs, targets, *, smoothing=0.0, alpha=1.0,
                             gamma=2.0, reduction="mean",
                             tile_rows=DEFAULT_TILE_ROWS, use_pallas=None):
    """Pallas implementation of SmoothFocalwLogits.forward."""
    assert inputs.shape == targets.shape
    n = int(math.prod(inputs.shape))
    assert n > 0

    # Fast paths: per-element reduction, or tiny inputs (module's 8x11 case) where
    # a fused XLA elementwise+reduce beats any pallas_call fixed overhead.
    if reduction not in ("mean", "sum"):
        return _focal_elementwise(inputs, targets, smoothing, alpha, gamma)
    take_pallas = use_pallas if use_pallas is not None else (n >= SMALL_N_PALLAS_MIN)
    if not take_pallas:
        focal = _focal_elementwise(inputs, targets, smoothing, alpha, gamma)
        total = jnp.sum(focal, dtype=jnp.float32)
        return total / jnp.float32(n) if reduction == "mean" else total

    # ---- Pallas path: lane-dense (rows, 128) view ----
    rows = pl.cdiv(n, LANES)
    x = inputs.reshape(-1)
    t = targets.reshape(-1)
    if rows * LANES != n:
        # Only a <128-element pad to make the flat->2D reshape legal; never pad to
        # a full tile (the in-kernel mask handles the ragged last block instead).
        pad = rows * LANES - n
        x = jnp.pad(x, (0, pad))
        t = jnp.pad(t, (0, pad))
    x2 = x.reshape(rows, LANES)
    t2 = t.reshape(rows, LANES)

    # Tile sizing: big enough to amortize per-step overhead, but split into >= ~4
    # tiles when possible so both v7x TensorCores get work on the parallel axis.
    sub = max(_sublane_multiple(inputs.dtype), _sublane_multiple(targets.dtype))
    tile_r = min(int(tile_rows), _round_up(pl.cdiv(rows, 4), sub))
    tile_r = max(sub, _round_up(tile_r, sub))
    strip_r = math.gcd(tile_r, 64)              # divides tile_r, multiple of `sub`
    num_tiles = pl.cdiv(rows, tile_r)

    covered = num_tiles * tile_r * LANES
    need_mask = covered != n
    n_valid_last = n - (num_tiles - 1) * tile_r * LANES   # valid elems in last tile

    kernel = functools.partial(
        _smooth_focal_kernel,
        smoothing=float(smoothing), alpha=float(alpha), gamma=float(gamma),
        tile_r=tile_r, strip_r=strip_r, lanes=LANES,
        need_mask=need_mask, num_tiles=num_tiles, n_valid_last=n_valid_last)

    in_bytes = tile_r * LANES * (jnp.dtype(inputs.dtype).itemsize
                                 + jnp.dtype(targets.dtype).itemsize)
    vmem_limit = int(max(32 * 1024 * 1024, 2 * in_bytes + 8 * 1024 * 1024))

    partials = pl.pallas_call(
        kernel,
        out_shape=jax.ShapeDtypeStruct((num_tiles * 8, LANES), jnp.float32),
        grid_spec=pltpu.PrefetchScalarGridSpec(
            num_scalar_prefetch=0,
            grid=(num_tiles,),
            in_specs=[
                pl.BlockSpec((tile_r, LANES), lambda i: (i, 0)),
                pl.BlockSpec((tile_r, LANES), lambda i: (i, 0)),
            ],
            out_specs=pl.BlockSpec((8, LANES), lambda i: (i, 0)),
        ),
        compiler_params=pltpu.CompilerParams(
            dimension_semantics=("parallel",),
            vmem_limit_bytes=vmem_limit,
        ),
    )(x2, t2)

    total = jnp.sum(partials, dtype=jnp.float32)
    if reduction == "mean":
        return total / jnp.float32(n)
    return total


def _reference(inputs, targets, *, smoothing, alpha, gamma, reduction="mean"):
    x = inputs.astype(jnp.float32)
    t = targets.astype(jnp.float32)
    t = t * (1.0 - smoothing) + 0.5 * smoothing
    bce = jnp.maximum(x, 0.0) - x * t + jnp.log1p(jnp.exp(-jnp.abs(x)))
    pt = jnp.exp(-bce)
    focal = alpha * (1.0 - pt) ** gamma * bce
    return jnp.mean(focal) if reduction == "mean" else jnp.sum(focal)


if __name__ == "__main__":
    key = jax.random.PRNGKey(0)
    ks = jax.random.split(key, 8)
    smoothing = 0.01  # e.g. CFG.smoothing[2]

    def check(logits, targets, **kw):
        loss = smooth_focal_with_logits(logits, targets, smoothing=smoothing,
                                        alpha=1.0, gamma=2.0, reduction="mean", **kw)
        loss = jax.block_until_ready(loss)
        ref = _reference(logits, targets, smoothing=smoothing, alpha=1.0, gamma=2.0)
        assert jnp.allclose(loss, ref, rtol=1e-4, atol=1e-6), (loss, ref, kw)

    # 1) The module's actual use case (batch=8, target_size=11) -> jnp fast path.
    check(jax.random.normal(ks[0], (8, 11), jnp.float32),
          (jax.random.uniform(ks[1], (8, 11)) > 0.5).astype(jnp.float32))

    # 2) Forced Pallas path: multi-tile, pad-to-128, last-tile masking (1 strip).
    check(jax.random.normal(ks[2], (300, 11), jnp.float32),
          (jax.random.uniform(ks[3], (300, 11)) > 0.5).astype(jnp.float32),
          use_pallas=True, tile_rows=8)

    # 3) Forced Pallas path: multi-strip fori_loop, ragged last block + pl.when mask.
    check(jax.random.normal(ks[4], (700, 100), jnp.float32),
          (jax.random.uniform(ks[5], (700, 100)) > 0.5).astype(jnp.float32),
          use_pallas=True, tile_rows=128)

    # 4) Forced Pallas path: exact multiple -> fully unmasked steady state.
    check(jax.random.normal(ks[6], (512, 128), jnp.float32),
          (jax.random.uniform(ks[7], (512, 128)) > 0.5).astype(jnp.float32),
          use_pallas=True, tile_rows=128)

    print("KERNEL_OK")
</pallas_src>

<mosaic_0001>
module attributes {stable_mosaic.version = 11 : i64} {
  func.func @_smooth_focal_kernel(%arg0: i32, %arg1: memref<8x128xf32, #tpu.memory_space<vmem>>, %arg2: memref<8x128xf32, #tpu.memory_space<vmem>>, %arg3: memref<8x128xf32, #tpu.memory_space<vmem>>) attributes {dimension_semantics = [#tpu.dimension_semantics<parallel>], iteration_bounds = array<i64: 4>, scalar_prefetch = 0 : i64, scratch_operands = 0 : i64, tpu.core_type = #tpu.core_type<tc>, window_params = [{transform_indices = @transform_0, window_bounds = array<i64: 8, 128>}, {transform_indices = @transform_1, window_bounds = array<i64: 8, 128>}, {transform_indices = @transform_2, window_bounds = array<i64: 8, 128>}]} {
    %c3_i32 = arith.constant 3 : i32
    %0 = arith.cmpi slt, %arg0, %c3_i32 : i32
    %1 = arith.extui %0 : i1 to i32
    %c0_i32 = arith.constant 0 : i32
    %2 = arith.cmpi ne, %1, %c0_i32 : i32
    scf.if %2 {
      %cst = arith.constant 0.000000e+00 : f32
      %6 = vector.broadcast %cst : f32 to vector<8x128xf32>
      %c0_i32_2 = arith.constant 0 : i32
      %7 = tpu.assume_multiple %c0_i32_2, 8 : i32
      %8 = arith.index_cast %7 : i32 to index
      %c0 = arith.constant 0 : index
      %9 = vector.load %arg1[%8, %c0] : memref<8x128xf32, #tpu.memory_space<vmem>>, vector<8x128xf32>
      %10 = arith.index_cast %7 : i32 to index
      %c0_3 = arith.constant 0 : index
      %11 = vector.load %arg2[%10, %c0_3] : memref<8x128xf32, #tpu.memory_space<vmem>>, vector<8x128xf32>
      %cst_4 = arith.constant 9.900000e-01 : f32
      %12 = vector.broadcast %cst_4 : f32 to vector<8x128xf32>
      %13 = arith.mulf %11, %12 : vector<8x128xf32>
      %cst_5 = arith.constant 5.000000e-03 : f32
      %14 = vector.broadcast %cst_5 : f32 to vector<8x128xf32>
      %15 = arith.addf %13, %14 : vector<8x128xf32>
      %cst_6 = arith.constant 0.000000e+00 : f32
      %16 = vector.broadcast %cst_6 : f32 to vector<8x128xf32>
      %17 = arith.maximumf %9, %16 : vector<8x128xf32>
      %18 = arith.mulf %9, %15 : vector<8x128xf32>
      %19 = arith.subf %17, %18 : vector<8x128xf32>
      %20 = math.absf %9 : vector<8x128xf32>
      %cst_7 = arith.constant 0.000000e+00 : f32
      %21 = vector.broadcast %cst_7 : f32 to vector<8x128xf32>
      %22 = arith.subf %21, %20 : vector<8x128xf32>
      %23 = math.exp %22 : vector<8x128xf32>
      %24 = math.log1p %23 : vector<8x128xf32>
      %25 = arith.addf %19, %24 : vector<8x128xf32>
      %cst_8 = arith.constant 0.000000e+00 : f32
      %26 = vector.broadcast %cst_8 : f32 to vector<8x128xf32>
      %27 = arith.subf %26, %25 : vector<8x128xf32>
      %28 = math.exp %27 : vector<8x128xf32>
      %cst_9 = arith.constant 1.000000e+00 : f32
      %29 = vector.broadcast %cst_9 : f32 to vector<8x128xf32>
      %30 = arith.subf %29, %28 : vector<8x128xf32>
      %31 = arith.mulf %30, %30 : vector<8x128xf32>
      %32 = arith.mulf %31, %25 : vector<8x128xf32>
      %33 = vector.shape_cast %32 : vector<8x128xf32> to vector<1x8x128xf32>
      %cst_10 = arith.constant dense<0.000000e+00> : vector<8x128xf32>
      %34 = vector.multi_reduction <add>, %33, %cst_10 [0] : vector<1x8x128xf32> to vector<8x128xf32>
      %35 = arith.addf %6, %34 : vector<8x128xf32>
      %c0_11 = arith.constant 0 : index
      %c0_12 = arith.constant 0 : index
      %36 = vector.load %arg3[%c0_11, %c0_12] : memref<8x128xf32, #tpu.memory_space<vmem>>, vector<8x128xf32>
      tpu.vector_store %arg3[%c0_11, %c0_12], %35 {strides = array<i32>} : memref<8x128xf32, #tpu.memory_space<vmem>>, vector<8x128xf32>,
    } else {
    }
    %c3_i32_0 = arith.constant 3 : i32
    %3 = arith.cmpi eq, %arg0, %c3_i32_0 : i32
    %4 = arith.extui %3 : i1 to i32
    %c0_i32_1 = arith.constant 0 : i32
    %5 = arith.cmpi ne, %4, %c0_i32_1 : i32
    scf.if %5 {
      %6 = tpu.iota {dimensions = array<i32: 0>} : vector<8x128xi32>
      %7 = tpu.iota {dimensions = array<i32: 1>} : vector<8x128xi32>
      %c128_i32 = arith.constant 128 : i32
      %8 = vector.broadcast %c128_i32 : i32 to vector<8x128xi32>
      %9 = arith.muli %6, %8 : vector<8x128xi32>
      %10 = arith.addi %9, %7 : vector<8x128xi32>
      %cst = arith.constant 0.000000e+00 : f32
      %11 = vector.broadcast %cst : f32 to vector<8x128xf32>
      %c0_i32_2 = arith.constant 0 : i32
      %12 = tpu.assume_multiple %c0_i32_2, 8 : i32
      %13 = arith.index_cast %12 : i32 to index
      %c0 = arith.constant 0 : index
      %14 = vector.load %arg1[%13, %c0] : memref<8x128xf32, #tpu.memory_space<vmem>>, vector<8x128xf32>
      %15 = arith.index_cast %12 : i32 to index
      %c0_3 = arith.constant 0 : index
      %16 = vector.load %arg2[%15, %c0_3] : memref<8x128xf32, #tpu.memory_space<vmem>>, vector<8x128xf32>
      %cst_4 = arith.constant 9.900000e-01 : f32
      %17 = vector.broadcast %cst_4 : f32 to vector<8x128xf32>
      %18 = arith.mulf %16, %17 : vector<8x128xf32>
      %cst_5 = arith.constant 5.000000e-03 : f32
      %19 = vector.broadcast %cst_5 : f32 to vector<8x128xf32>
      %20 = arith.addf %18, %19 : vector<8x128xf32>
      %cst_6 = arith.constant 0.000000e+00 : f32
      %21 = vector.broadcast %cst_6 : f32 to vector<8x128xf32>
      %22 = arith.maximumf %14, %21 : vector<8x128xf32>
      %23 = arith.mulf %14, %20 : vector<8x128xf32>
      %24 = arith.subf %22, %23 : vector<8x128xf32>
      %25 = math.absf %14 : vector<8x128xf32>
      %cst_7 = arith.constant 0.000000e+00 : f32
      %26 = vector.broadcast %cst_7 : f32 to vector<8x128xf32>
      %27 = arith.subf %26, %25 : vector<8x128xf32>
      %28 = math.exp %27 : vector<8x128xf32>
      %29 = math.log1p %28 : vector<8x128xf32>
      %30 = arith.addf %24, %29 : vector<8x128xf32>
      %cst_8 = arith.constant 0.000000e+00 : f32
      %31 = vector.broadcast %cst_8 : f32 to vector<8x128xf32>
      %32 = arith.subf %31, %30 : vector<8x128xf32>
      %33 = math.exp %32 : vector<8x128xf32>
      %cst_9 = arith.constant 1.000000e+00 : f32
      %34 = vector.broadcast %cst_9 : f32 to vector<8x128xf32>
      %35 = arith.subf %34, %33 : vector<8x128xf32>
      %36 = arith.mulf %35, %35 : vector<8x128xf32>
      %37 = arith.mulf %36, %30 : vector<8x128xf32>
      %c128_i32_10 = arith.constant 128 : i32
      %38 = arith.muli %12, %c128_i32_10 : i32
      %39 = vector.broadcast %38 : i32 to vector<8x128xi32>
      %40 = arith.addi %10, %39 : vector<8x128xi32>
      %c228_i32 = arith.constant 228 : i32
      %41 = vector.broadcast %c228_i32 : i32 to vector<8x128xi32>
      %42 = arith.cmpi slt, %40, %41 : vector<8x128xi32>
      %cst_11 = arith.constant 0.000000e+00 : f32
      %43 = vector.broadcast %cst_11 : f32 to vector<8x128xf32>
      %44 = arith.select %42, %37, %43 : vector<8x128xi1>, vector<8x128xf32>
      %45 = vector.shape_cast %44 : vector<8x128xf32> to vector<1x8x128xf32>
      %cst_12 = arith.constant dense<0.000000e+00> : vector<8x128xf32>
      %46 = vector.multi_reduction <add>, %45, %cst_12 [0] : vector<1x8x128xf32> to vector<8x128xf32>
      %47 = arith.addf %11, %46 : vector<8x128xf32>
      %c0_13 = arith.constant 0 : index
      %c0_14 = arith.constant 0 : index
      %48 = vector.load %arg3[%c0_13, %c0_14] : memref<8x128xf32, #tpu.memory_space<vmem>>, vector<8x128xf32>
      tpu.vector_store %arg3[%c0_13, %c0_14], %47 {strides = array<i32>} : memref<8x128xf32, #tpu.memory_space<vmem>>, vector<8x128xf32>,
    } else {
    }
    return
  }
  func.func @transform_0(%arg0: i32) -> (i32, i32) {
    %c0_i32 = arith.constant 0 : i32
    %c0_i32_0 = arith.constant 0 : i32
    return %arg0, %c0_i32 : i32, i32
  }
  func.func @transform_1(%arg0: i32) -> (i32, i32) {
    %c0_i32 = arith.constant 0 : i32
    %c0_i32_0 = arith.constant 0 : i32
    return %arg0, %c0_i32 : i32, i32
  }
  func.func @transform_2(%arg0: i32) -> (i32, i32) {
    %c0_i32 = arith.constant 0 : i32
    %c0_i32_0 = arith.constant 0 : i32
    return %arg0, %c0_i32 : i32, i32
  }
}

</mosaic_0001>

<bundles_post_ra>
// kernel: tpu_custom_call.1
= control target key start
LH: loop header
LB: loop body
LE: loop exit
PB: predicated region body
PF: predicated region fallthrough
CT: control target
= control target key end

     0   :  { %7 = vsyncpa [#allocation3], 0  ;;  %s833_s0 = inlined_call_operand.hbm [shape: f32[26,128], index: 0, kind: input, shape index: {}]   ;;  %s834_s1 = inlined_call_operand.hbm [shape: f32[26,128], index: 1, kind: input, shape index: {}]   ;;  %s835_s2 = inlined_call_operand.hbm [shape: f32[32,128], index: 2, kind: output, shape index: {}]  }
   0x1   :  { %9 = vsyncpa [#allocation3 + $0x1], 0 }
   0x2   :  { %10 = vsyncpa [#allocation6], 0 }
   0x3   :  { %12 = vsyncpa [#allocation6 + $0x1], 0 }
   0x4   :  { %13 = vsyncpa [#allocation4], 0 }
   0x5   :  { %15 = vsyncpa [#allocation4 + $0x1], 0  ;;  %s612_s9 = smov 0   ;;  %s614_s10 = smov 0  }
   0x6   :  { %s616_s11 = smov 0   ;;  %s618_s12 = smov 0  }
   0x7 LB: > { %s633_s13 = sadd.s32 4294967295, %s592_s12   ;;  %s382_s14 = sadd.s32 4294967294, %s592_s12   ;;  %s592_s12 = sphi %s618_s12, %s853_s12   ;;  %s588_s11 = sphi %s616_s11, %s852_s11   ;;  %s584_s10 = sphi %s614_s10, %s851_s10   ;;  %s580_s9 = sphi %s612_s9, %s850_s9  }
   0x8   : > { %s637_s15 = sadd.s32 1, %s592_s12   ;;  %s28_s16 = sadd.s32 1, %s588_s11 }
   0x9   : > { %s25_s17 = ssub.s32 %s592_s12, %s637_s15  ;;  %p35_p0 = scmp.ne.s32.totalorder %s588_s11, %s584_s10 }
   0xa   : > { %p26_p1 = scmp.eq.s32.totalorder %s25_s17, 0  ;;  %p36_p2 = scmp.eq.s32.totalorder %s592_s12, 0 }
   0xb   : > { %p41_p3 = scmp.ne.s32.totalorder %s584_s10, %s580_s9  ;;  %p42_p4 = scmp.eq.s32.totalorder %s633_s13, 0 }
   0xc   : > { %s649_s18 = scalar_select %p26_p1, %s588_s11, %s28_s16  }
   0xd   : > { %p651_p5 = por %p36_p2, %p35_p0  ;;  %p655_p6 = por %p42_p4, %p41_p3 }
   0xe   : > { %p91_p7 = scmp.eq.s32.totalorder %s633_s13, 3  ;;  %p97_p8 = scmp.eq.s32.totalorder %s382_s14, 3 }
   0xf   : > { %s839_s20 = scalar_select %p655_p6, 1, 0 }
  0x10   : > { %p416_p9 = scmp.lt.s32.totalorder %s592_s12, 4  ;;  %p661_p10 = por %p91_p7, %p35_p0 }
  0x11   : > { %p665_p11 = por %p97_p8, %p41_p3  ;;  %s670_s23 = sand.u32 1, %s588_s11  }
  0x12   : > { %s840_s21 = scalar_select %p661_p10, 1, 0 }
  0x13   : > { %s841_s22 = scalar_select %p665_p11, 1, 0 }
  0x14   : > { %s386_s24 = sshll.u32 %s592_s12, 7  ;;  %s385_s25 = sshll.u32 %s670_s23, 3 }
  0x15   : > { %s679_s28 = scalar_lea.hbm %s833_s0, %s386_s24  ;;  %s121_s29 = scalar_lea.vmem [#allocation2], %s385_s25 }
  0x16   : > { %s128_s30 = sshll.u32 %s121_s29, 4  ;;  %p685_p12 = pnand %p416_p9, %p651_p5  ;;  %s689_s30 = int_to_ptr.vmem [resolvable:$true] %s128_s30 }
  0x17   : > { %s118_s4 = scalar_lea.sflag [#allocation3], %s670_s23  ;;  %s462_s5 = scalar_lea.hbm %s679_s28, 128 }
  0x18   : > { %p463_p1 = scmp.ne.s32.totalorder %s679_s28, %s462_s5  ;;  %p464_p2 = pneg %p685_p12 }
  0x19   : > { %s467_s8 = scalar_lea.hbm %s833_s0, 512  ;;  %p468_p5 = scmp.lt.u32.totalorder %s679_s28, %s833_s0 }
  0x1a   : > { %p465_p3 = pnand %p464_p2, %p463_p1  ;;  %p469_p7 = scmp.lt.u32.totalorder %s467_s8, %s462_s5 }
  0x1b   : > { %p471_p9 = scmp.lt.u32.totalorder %s462_s5, %s679_s28 }
  0x1c   : > { %p466_p4 = pneg %p465_p3  ;;  %p470_p8 = por %p469_p7, %p468_p5 }
  0x1e   : > { %p472_p13 = por %p471_p9, %p470_p8 }
  0x20   : > { %p473_p0 = pnand %p472_p13, %p466_p4 }
  0x22   : > { %476 = shalt.err (!%p473_p0)
}
  0x23   : > { %s477_s17 = scalar_lea.vmem %s689_s30, 128  ;;  %s594_s19 = smov [#allocation2]  }
  0x24   : > { %p478_p1 = scmp.ne.s32.totalorder %s689_s30, %s477_s17  ;;  %s482_s26 = sshll.u32 %s594_s19, 4  ;;  %s483_s26 = int_to_ptr.vmem [resolvable:$false] %s482_s26 }
  0x25   : > { %s484_s27 = scalar_lea.vmem %s483_s26, 256  ;;  %p485_p10 = scmp.lt.s32.totalorder %s689_s30, %s483_s26 }
  0x26   : > { %p480_p3 = pnand %p478_p1, %p464_p2  ;;  %p486_p5 = scmp.lt.s32.totalorder %s484_s27, %s477_s17 }
  0x28   : > { %p481_p11 = pneg %p480_p3  ;;  %p487_p7 = por %p486_p5, %p485_p10 }
  0x2a   : > { %p488_p8 = pnand %p487_p7, %p481_p11 }
  0x2c   : > { %491 = shalt.err (!%p488_p8)
}
  0x2d   : > { %408 = dma.hbm_to_vmem [thread:$0]  (!%p685_p12), %s679_s28, 128, %s689_s30, %s118_s4  }
  0x2e   : > { %p843_p13 = scmp.lt.s32.totalorder %s592_s12, 5  ;;  %p844_p0 = scmp.ge.s32.totalorder %s592_s12, 1 }
  0x2f   : > { %s732_s7 = scalar_lea.hbm %s834_s1, %s386_s24  ;;  %s139_s8 = scalar_lea.vmem [#allocation5], %s385_s25 }
  0x30   : > { %p723_p4 = pnand %p844_p0, %p843_p13  ;;  %s146_s14 = sshll.u32 %s139_s8, 4  ;;  %s147_s14 = int_to_ptr.vmem [resolvable:$true] %s146_s14 }
  0x31   : > { %s136_s28 = scalar_lea.sflag [#allocation6], %s670_s23  ;;  %s492_s30 = scalar_lea.hbm %s732_s7, 128 }
  0x32   : > { %s845_s29 = scalar_select %p723_p4, 1, 0 }
  0x33   : > { %p493_p10 = scmp.ne.s32.totalorder %s732_s7, %s492_s30  ;;  %s497_s24 = scalar_lea.hbm %s834_s1, 512 }
  0x34   : > { %p498_p1 = scmp.lt.u32.totalorder %s732_s7, %s834_s1  ;;  %p499_p3 = scmp.lt.u32.totalorder %s497_s24, %s492_s30 }
  0x35   : > { %p495_p11 = pnand %p493_p10, %p464_p2  ;;  %p501_p7 = scmp.lt.u32.totalorder %s492_s30, %s732_s7 }
  0x36   : > { %p500_p5 = por %p499_p3, %p498_p1 }
  0x37   : > { %p496_p9 = pneg %p495_p11 }
  0x38   : > { %p502_p8 = por %p501_p7, %p500_p5 }
  0x3a   : > { %p503_p13 = pnand %p502_p8, %p496_p9 }
  0x3c   : > { %506 = shalt.err (!%p503_p13)
}
  0x3d   : > { %s507_s23 = scalar_lea.vmem %s147_s14, 128  ;;  %s595_s25 = smov [#allocation5]  }
  0x3e   : > { %p508_p0 = scmp.ne.s32.totalorder %s147_s14, %s507_s23  ;;  %s512_s26 = sshll.u32 %s595_s25, 4  ;;  %s513_s26 = int_to_ptr.vmem [resolvable:$false] %s512_s26 }
  0x3f   : > { %s514_s27 = scalar_lea.vmem %s513_s26, 256  ;;  %p515_p6 = scmp.lt.s32.totalorder %s147_s14, %s513_s26 }
  0x40   : > { %p510_p10 = pnand %p508_p0, %p464_p2  ;;  %p516_p4 = scmp.lt.s32.totalorder %s514_s27, %s507_s23 }
  0x42   : > { %p511_p11 = pneg %p510_p10  ;;  %p517_p1 = por %p516_p4, %p515_p6 }
  0x44   : > { %p518_p3 = pnand %p517_p1, %p511_p11 }
  0x46   : > { %521 = shalt.err (!%p518_p3)
}
  0x47   : > { %411 = dma.hbm_to_vmem [thread:$0]  (!%p685_p12), %s732_s7, 128, %s147_s14, %s136_s28  }
  0x48   : > { %p846_p9 = scmp.ne.s32.totalorder %s845_s29, 0 }
  0x49   : > { %s759_s5 = sand.u32 (!%p846_p9), 1, %s584_s10   ;;  %p847_p6 = scmp.ne.s32.totalorder (!%p846_p9), %s839_s20, 0 }
  0x4a   : > { %155 = sbr.rel (%p846_p9) target bundleno = 228 (0xe4), region = 28  ;;  %s762_s6 = sshll.u32 (!%p846_p9), %s759_s5, 3 }
  0x4b   : > { %s158_s8 = scalar_lea.sflag (!%p846_p9), [#allocation3], %s759_s5  ;;  %s161_s30 = scalar_lea.vmem (!%p846_p9), [#allocation2], %s762_s6 }
  0x51   : > { %567 = dma.done.wait (%p847_p6), %s158_s8, 128  }
  0x52   : > { %569 = vsyncadd (%p847_p6), %s158_s8, 4294967168  ;;  %s167_s3 = scalar_lea.sflag [#allocation6], %s759_s5  ;;  %s170_s29 = scalar_lea.vmem [#allocation5], %s762_s6 }
  0x53   : > { %571 = dma.done.wait (%p847_p6), %s167_s3, 128  }
  0x54   : > { %573 = vsyncadd (%p847_p6), %s167_s3, 4294967168  ;;  %s777_s7 = scalar_lea.vmem [#allocation7], %s762_s6  ;;  %p393_p12 = scmp.ge.s32.totalorder %s633_s13, 3 }
  0x55   : > { %v200_v0 = vld [vmem:[%s161_s30] sm:$0xff] (!%p393_p12)  ;;  %v201_v4 = vld [vmem:[%s170_s29] sm:$0xff] (!%p393_p12) }
  0x56   : > { %199 = sbr.rel (%p393_p12) target bundleno = 143 (0x8f), region = 40  ;;  %v207_v1 = vand.u32 (!%p393_p12), 2147483647, %v200_v0  ;;  %v202_v6 = vmul.f32 (!%p393_p12), 0.99, %v201_v4  ;;  %v204_v11 = vmax.f32 (!%p393_p12), %v200_v0, 0.0 }
  0x58   : > { %v208_v2 = vsub.f32 (!%p393_p12), 0.0, %v207_v1  ;;  %v203_v9 = vadd.f32 (!%p393_p12), 0.005, %v202_v6 }
  0x5a   : > { %v209_v3 = vmul.f32 (!%p393_p12), 1.442695, %v208_v2  ;;  %v205_v12 = vmul.f32 (!%p393_p12), %v203_v9, %v200_v0 }
  0x5c   : > { %450 = vpow2.f32 (!%p393_p12), %v209_v3  ;;  %v206_v16 = vsub.f32 (!%p393_p12), %v204_v11, %v205_v12 }
  0x66   : > { %v451_v5 = vpop.eup %450 }
  0x67   : > { %v211_v7 = vadd.f32 1.0, %v451_v5  ;;  %v214_v8 = vmul.f32 -0.5, %v451_v5  ;;  %v217_v13 = vand.u32 2147483647, %v451_v5 }
  0x69   : > { %452 = vlog2.f32 %v211_v7  ;;  %v215_v10 = vadd.f32 1.0, %v214_v8  ;;  %vm218_vm0 = vcmp.lt.f32.partialorder %v217_v13, 0.0004427343 }
  0x6b   : > { %v216_v14 = vmul.f32 %v451_v5, %v215_v10 }
  0x73   : > { %v453_v15 = vpop.eup %452 }
  0x74   : > { %v213_v17 = vmul.f32 0.6931472, %v453_v15 }
  0x76   : > { %v219_v18 = vsel %vm218_vm0, %v216_v14, %v213_v17 }
  0x77   : > { %v220_v19 = vadd.f32 %v219_v18, %v206_v16 }
  0x79   : > { %v221_v20 = vsub.f32 0.0, %v220_v19 }
  0x7b   : > { %v222_v21 = vmul.f32 1.442695, %v221_v20 }
  0x7d   : > { %454 = vpow2.f32 %v222_v21 }
  0x87   : > { %v455_v22 = vpop.eup %454 }
  0x88   : > { %v224_v23 = vsub.f32 1.0, %v455_v22 }
  0x8a   : > { %v225_v24 = vmul.f32 %v224_v23, %v224_v23 }
  0x8c   : > { %v226_v25 = vmul.f32 %v225_v24, %v220_v19 }
  0x8e   : > { %229 = vst [vmem:[%s777_s7] sm:$0xff] %v226_v25 }
  0x8f PF: > { %p394_p2 = scmp.ne.s32.totalorder %s633_s13, 3 }
  0x90   : > { %v240_v26 = vld [vmem:[%s161_s30] sm:$0xff] (!%p394_p2)  ;;  %v241_v30 = vld [vmem:[%s170_s29] sm:$0xff] (!%p394_p2)  ;;  %v234_v47 = vlaneseq (!%p394_p2) }
  0x91   : > { %233 = sbr.rel (%p394_p2) target bundleno = 203 (0xcb), region = 44  ;;  %v247_v27 = vand.u32 (!%p394_p2), 2147483647, %v240_v26  ;;  %v242_v32 = vmul.f32 (!%p394_p2), 0.99, %v241_v30  ;;  %v244_v37 = vmax.f32 (!%p394_p2), %v240_v26, 0.0 }
  0x92   : > { %v235_v49 = vshrl.u32 (!%p394_p2), %v234_v47, 7  ;;  %v237_v50 = vand.u32 (!%p394_p2), 127, %v234_v47 }
  0x93   : > { %v248_v28 = vsub.f32 (!%p394_p2), 0.0, %v247_v27  ;;  %v243_v35 = vadd.f32 (!%p394_p2), 0.005, %v242_v32 }
  0x94   : > { %v238_v51 = vmul.u32 (!%p394_p2), 128, %v235_v49 }
  0x95   : > { %v249_v29 = vmul.f32 (!%p394_p2), 1.442695, %v248_v28  ;;  %v245_v38 = vmul.f32 (!%p394_p2), %v243_v35, %v240_v26 }
  0x96   : > { %v239_v53 = vadd.s32 (!%p394_p2), %v238_v51, %v237_v50 }
  0x97   : > { %456 = vpow2.f32 (!%p394_p2), %v249_v29  ;;  %v246_v42 = vsub.f32 (!%p394_p2), %v244_v37, %v245_v38 }
  0x98   : > { %vm270_vm2 = vcmp.lt.s32.totalorder %v239_v53, 228 }
  0xa1   : > { %v457_v31 = vpop.eup %456 }
  0xa2   : > { %v251_v33 = vadd.f32 1.0, %v457_v31  ;;  %v254_v34 = vmul.f32 -0.5, %v457_v31  ;;  %v257_v39 = vand.u32 2147483647, %v457_v31 }
  0xa4   : > { %458 = vlog2.f32 %v251_v33  ;;  %v255_v36 = vadd.f32 1.0, %v254_v34  ;;  %vm258_vm1 = vcmp.lt.f32.partialorder %v257_v39, 0.0004427343 }
  0xa6   : > { %v256_v40 = vmul.f32 %v457_v31, %v255_v36 }
  0xae   : > { %v459_v41 = vpop.eup %458 }
  0xaf   : > { %v253_v43 = vmul.f32 0.6931472, %v459_v41 }
  0xb1   : > { %v259_v44 = vsel %vm258_vm1, %v256_v40, %v253_v43 }
  0xb2   : > { %v260_v45 = vadd.f32 %v259_v44, %v246_v42 }
  0xb4   : > { %v261_v46 = vsub.f32 0.0, %v260_v45 }
  0xb6   : > { %v262_v48 = vmul.f32 1.442695, %v261_v46 }
  0xb8   : > { %460 = vpow2.f32 %v262_v48 }
  0xc2   : > { %v461_v52 = vpop.eup %460 }
  0xc3   : > { %v264_v54 = vsub.f32 1.0, %v461_v52 }
  0xc5   : > { %v265_v55 = vmul.f32 %v264_v54, %v264_v54 }
  0xc7   : > { %v266_v56 = vmul.f32 %v265_v55, %v260_v45 }
  0xc9   : > { %v271_v57 = vsel %vm270_vm2, %v266_v56, 0.0 }
  0xca   : > { %274 = vst [vmem:[%s777_s7] sm:$0xff] %v271_v57 }
  0xcb PF: > { %s396_s20 = sshll.u32 %s633_s13, 7  ;;  %s289_s16 = sshll.u32 %s777_s7, 4  ;;  %s290_s16 = int_to_ptr.vmem [resolvable:$true] %s289_s16 }
  0xcc   : > { %s795_s4 = scalar_lea.hbm %s835_s2, %s396_s20  ;;  %s276_s24 = scalar_lea.sflag [#allocation4], %s759_s5 }
  0xcd   : > { %s522_s17 = scalar_lea.vmem %s290_s16, 128  ;;  %p848_p5 = scmp.ne.s32.totalorder %s840_s21, 0 }
  0xce   : > { %p523_p4 = scmp.ne.s32.totalorder %s290_s16, %s522_s17  ;;  %s596_s19 = smov [#allocation7]  }
  0xcf   : > { %s526_s23 = sshll.u32 %s596_s19, 4  ;;  %s527_s23 = int_to_ptr.vmem [resolvable:$false] %s526_s23 }
  0xd0   : > { %p524_p7 = pnand %p523_p4, %p848_p5  ;;  %s528_s25 = scalar_lea.vmem %s527_s23, 256 }
  0xd1   : > { %p529_p13 = scmp.lt.s32.totalorder %s290_s16, %s527_s23  ;;  %p530_p0 = scmp.lt.s32.totalorder %s528_s25, %s522_s17 }
  0xd2   : > { %p525_p8 = pneg %p524_p7 }
  0xd3   : > { %p531_p10 = por %p530_p0, %p529_p13 }
  0xd5   : > { %p532_p11 = pnand %p531_p10, %p525_p8 }
  0xd7   : > { %535 = shalt.err (!%p532_p11)
}
  0xd8   : > { %s536_s13 = scalar_lea.hbm %s795_s4, 128  ;;  %s540_s5 = scalar_lea.hbm %s835_s2, 512 }
  0xd9   : > { %p537_p1 = scmp.ne.s32.totalorder %s795_s4, %s536_s13  ;;  %p541_p6 = scmp.lt.u32.totalorder %s795_s4, %s835_s2 }
  0xda   : > { %p542_p12 = scmp.lt.u32.totalorder %s540_s5, %s536_s13  ;;  %p544_p4 = scmp.lt.u32.totalorder %s536_s13, %s795_s4 }
  0xdb   : > { %p538_p3 = pnand %p537_p1, %p848_p5 }
  0xdc   : > { %p543_p2 = por %p542_p12, %p541_p6 }
  0xdd   : > { %p539_p9 = pneg %p538_p3 }
  0xde   : > { %p545_p7 = por %p544_p4, %p543_p2 }
  0xe0   : > { %p546_p8 = pnand %p545_p7, %p539_p9 }
  0xe2   : > { %549 = shalt.err (!%p546_p8)
}
  0xe3   : > { %403 = dma.vmem_to_hbm [thread:$0]  (%p848_p5), %s290_s16, 128, %s795_s4, %s276_s24  }
  0xe4 PF: > { %p417_p13 = scmp.ge.s32.totalorder %s592_s12, 2  ;;  %s301_s30 = sand.u32 1, %s580_s9  }
  0xe5   : > { %p849_p0 = scmp.ne.s32.totalorder %s841_s22, 0  ;;  %s302_s3 = scalar_lea.sflag [#allocation4], %s301_s30 }
  0xe7   : > { %p413_p10 = pnand %p417_p13, %p849_p0 }
  0xe9   : > { %575 = dma.done.wait (!%p413_p10), %s302_s3, 128  }
  0xea   : > { %577 = vsyncadd (!%p413_p10), %s302_s3, 4294967168  ;;  %p18_p11 = scmp.ge.s32.totalorder %s637_s15, 6   ;;  %s850_s9 = smov %s584_s10 }
  0xeb   : > { %s851_s10 = smov %s588_s11  ;;  %s852_s11 = smov %s649_s18 }
  0xec   : > { %s853_s12 = smov %s637_s15  ;;  %20 = sbr.rel (!%p18_p11) target bundleno = 7 (0x7), region = 94 }
  0xf3   :  { %307 = vsyncpa [#allocation3], 1 }
  0xf4   :  { %309 = vsyncpa [#allocation3 + $0x1], 1 }
  0xf5   :  { %310 = vsyncpa [#allocation6], 1 }
  0xf6   :  { %312 = vsyncpa [#allocation6 + $0x1], 1 }
  0xf7   :  { %313 = vsyncpa [#allocation4], 1 }
  0xf8   :  { %315 = vsyncpa [#allocation4 + $0x1], 1 }

</bundles_post_ra>
